<compile_context>
chip_gen: v5e
topology: v5e:2x2
jax: 0.10.0
libtpu: 0.0.40
codegen_flags: <defaults>
</compile_context>

<pallas_src>
import functools
import re

import jax
import jax.numpy as jnp
from jax import lax
from jax.experimental import pallas as pl
from jax.experimental.pallas import tpu as pltpu


def _reference_loss(logit):
    """Pure-JAX reference: CrossEntropyLoss(logit, arange(B)), mean reduction."""
    x = logit.astype(jnp.float32)
    logp = jax.nn.log_softmax(x, axis=-1)
    return -jnp.mean(jnp.diagonal(logp))


def _tpu_generation():
    """Best-effort TPU generation number (4, 5, 6, 7, ...); 0 if unknown."""
    try:
        kind = jax.devices()[0].device_kind.lower()
    except Exception:
        return 0
    m = re.search(r"(\d+)", kind)
    return int(m.group(1)) if m else 0


def _device_plan():
    """Per-generation tiling / VMEM / precision plan."""
    gen = _tpu_generation()
    if gen >= 7:
        # v7x: 64 MiB physical VMEM per TC, 2 TCs.  Real per-block footprint is
        # ~2x slab (double buffer) + a few full-width f32 temporaries, so keep
        # the slab small and stay inside the 32 MiB scoped default.  Keep >= 2
        # row blocks so the parallel axis can use both TensorCores.
        return dict(gen=gen, slab_budget=2 << 20, vmem_limit=None,
                    bf16_exp=True, want_multicore=True)
    if gen == 6:
        # v6e: HBM-bound; bigger DMAs (fewer grid steps) move us up the
        # roofline.  128 MiB physical VMEM, 32 MiB scoped default -> raise it.
        return dict(gen=gen, slab_budget=8 << 20, vmem_limit=64 << 20,
                    bf16_exp=True, want_multicore=False)
    if 1 <= gen <= 5:
        # v5e and older: most bandwidth-starved; same big-tile treatment, but
        # no bf16 EUP so exp stays f32 (it hides under the HBM DMA anyway).
        return dict(gen=gen, slab_budget=8 << 20, vmem_limit=64 << 20,
                    bf16_exp=False, want_multicore=False)
    # Unknown device: conservative defaults that fit every scoped-VMEM default.
    return dict(gen=gen, slab_budget=2 << 20, vmem_limit=None,
                bf16_exp=False, want_multicore=False)


def _choose_tile_rows(b, itemsize, plan):
    """Pick tile_rows: multiple of 128, divides B, slab fits the budget."""
    if b % 128 != 0:
        return None  # route to plain-JAX fallback (avoid lane-padded blocks)
    max_tile = b
    if plan["want_multicore"]:
        # Keep >= 2 (ideally 4) row blocks for dual-TC sharding on v7x.
        if b >= 512:
            max_tile = b // 4
        elif b >= 256:
            max_tile = b // 2
    for t in (1024, 512, 256, 128):
        if t > max_tile or b % t:
            continue
        if t * b * itemsize <= plan["slab_budget"]:
            return t
    # Very large B: even a 128-row slab exceeds the budget; 128 still
    # double-buffers comfortably within the scoped-VMEM defaults.
    return 128


def _partial_kernel(row_ref, diag_ref, partial_ref, *, use_bf16_exp):
    """One row block: emit sum_r (logsumexp(row r) - logit[r, r_global])."""
    x = row_ref[...].astype(jnp.float32)                         # (TILE_R, B)

    # Numerically-stable per-row logsumexp.
    m = jnp.max(x, axis=-1, keepdims=True)                       # (TILE_R, 1)
    xc = x - m                                                   # <= 0
    if use_bf16_exp:
        # v6e/v7x: packed bf16 exp ~2x EUP throughput; accumulate directly in
        # f32 (no full-width f32 materialisation of the exp result).
        s = jnp.sum(jnp.exp(xc.astype(jnp.bfloat16)), axis=-1, keepdims=True,
                    dtype=jnp.float32)
    else:
        s = jnp.sum(jnp.exp(xc), axis=-1, keepdims=True)
    lse = jnp.log(s) + m                                         # (TILE_R, 1)

    # diag_ref is the (i, i) block of the same logit matrix, so its local
    # diagonal IS the global diagonal (target[g] = g).  Compare/select over
    # tile_rows^2 elements only (vs. the old full-width tile_rows*B scan).
    d = diag_ref[...].astype(jnp.float32)                        # (TILE_R, TILE_R)
    r_id = lax.broadcasted_iota(jnp.int32, d.shape, 0)
    c_id = lax.broadcasted_iota(jnp.int32, d.shape, 1)
    diag = jnp.sum(jnp.where(r_id == c_id, d, 0.0), axis=-1,
                   keepdims=True)                                # (TILE_R, 1)

    # Per-block partial sum, broadcast lane-dense into this block's (8, 128)
    # output tile (unmasked vector store; wrapper reads one lane per tile).
    partial = jnp.sum(lse - diag)
    partial_ref[...] = jnp.full(partial_ref.shape, partial, dtype=jnp.float32)


def _pallas_loss(logit, tile_rows, plan):
    b = logit.shape[0]
    num_tiles = b // tile_rows
    kernel = functools.partial(_partial_kernel, use_bf16_exp=plan["bf16_exp"])
    partials = pl.pallas_call(
        kernel,
        out_shape=jax.ShapeDtypeStruct((8, num_tiles * 128), jnp.float32),
        grid=(num_tiles,),
        in_specs=[
            # Full-width row slab (double-buffered HBM->VMEM pipeline).
            pl.BlockSpec((tile_rows, b), lambda i: (i, 0)),
            # Diagonal block of the same array: tiny second DMA, replaces the
            # full-width iota/where diagonal selection.
            pl.BlockSpec((tile_rows, tile_rows), lambda i: (i, i)),
        ],
        # One lane-dense (8, 128) tile per row block -> no resident scalar
        # accumulator, so the grid axis stays "parallel" (v7x dual-TC capable).
        out_specs=pl.BlockSpec((8, 128), lambda i: (0, i)),
        compiler_params=pltpu.CompilerParams(
            dimension_semantics=("parallel",),
            vmem_limit_bytes=plan["vmem_limit"]),
    )(logit, logit)
    # Every element of output tile i holds the same partial; read lane 0 of
    # each tile and apply CrossEntropyLoss's default "mean" reduction.
    per_block = partials[0, 0::128]                              # (num_tiles,)
    return jnp.sum(per_block) / jnp.float32(b)


def sampled_softmax_loss(logit, tile_rows=None, bf16_inputs=False):
    """logit: (B, B) score matrix (row = sample, col = class == other sample).

    bf16_inputs=True halves HBM traffic (big win on bandwidth-bound v5e/v6e)
    at the cost of bf16-rounded logits; accumulation stays f32.
    """
    assert logit.ndim == 2 and logit.shape[0] == logit.shape[1], (
        "sampled softmax expects a square (batch, batch) score matrix")
    b = logit.shape[0]
    plan = _device_plan()
    if bf16_inputs:
        logit = logit.astype(jnp.bfloat16)
    itemsize = jnp.dtype(logit.dtype).itemsize
    if tile_rows is None:
        tile_rows = _choose_tile_rows(b, itemsize, plan)
    elif b % tile_rows != 0 or tile_rows % 128 != 0:
        tile_rows = None
    if tile_rows is None:
        # Tiny / non-128-multiple batches: pallas_call launch + DMA setup and
        # lane padding dwarf the O(B^2) flops; let XLA fuse plain JAX instead.
        return _reference_loss(logit)
    return _pallas_loss(logit, tile_rows, plan)


if __name__ == "__main__":
    k0, k1 = jax.random.split(jax.random.PRNGKey(0))

    # Session-parallel mini-batch: B x B score matrix, positives on the diagonal.
    B = 256
    logit = jax.random.normal(k0, (B, B), dtype=jnp.float32)
    ref = _reference_loss(logit)

    plan = _device_plan()
    if plan["bf16_exp"]:
        tol = dict(atol=5e-2, rtol=1e-2)   # bf16-exp path on v6e/v7x
    else:
        tol = dict(atol=1e-5, rtol=1e-5)

    # Forced 2-block grid (tile_rows=128) exercises the pipelined multi-block
    # path and the per-block partial-sum reduction.
    loss_forced = sampled_softmax_loss(logit, tile_rows=128)
    jax.block_until_ready(loss_forced)
    assert jnp.allclose(loss_forced, ref, **tol), (loss_forced, ref)

    # Auto-chosen tile size (generation-dependent VMEM plan).
    loss_auto = sampled_softmax_loss(logit)
    jax.block_until_ready(loss_auto)
    assert jnp.allclose(loss_auto, ref, **tol), (loss_auto, ref)

    # Opt-in bf16-input path (halves HBM bytes on bandwidth-bound chips).
    loss_bf16 = sampled_softmax_loss(logit, bf16_inputs=True)
    jax.block_until_ready(loss_bf16)
    assert jnp.allclose(loss_bf16, ref, atol=1e-1, rtol=5e-2), (loss_bf16, ref)

    # Non-multiple-of-128 batch routes to the fused plain-JAX fallback.
    tiny = jax.random.normal(k1, (24, 24), dtype=jnp.float32)
    loss_tiny = sampled_softmax_loss(tiny)
    jax.block_until_ready(loss_tiny)
    assert jnp.allclose(loss_tiny, _reference_loss(tiny), atol=1e-5, rtol=1e-5)

    print("KERNEL_OK")
</pallas_src>

<mosaic_0001>
module attributes {stable_mosaic.version = 11 : i64} {
  func.func @_partial_kernel(%arg0: i32, %arg1: memref<128x256xf32, #tpu.memory_space<vmem>>, %arg2: memref<128x128xf32, #tpu.memory_space<vmem>>, %arg3: memref<8x128xf32, #tpu.memory_space<vmem>>) attributes {dimension_semantics = [#tpu.dimension_semantics<parallel>], iteration_bounds = array<i64: 2>, scalar_prefetch = 0 : i64, scratch_operands = 0 : i64, tpu.core_type = #tpu.core_type<tc>, window_params = [{transform_indices = @transform_0, window_bounds = array<i64: 128, 256>}, {transform_indices = @transform_1, window_bounds = array<i64: 128, 128>}, {transform_indices = @transform_2, window_bounds = array<i64: 8, 128>}]} {
    %c0 = arith.constant 0 : index
    %c0_0 = arith.constant 0 : index
    %0 = vector.load %arg1[%c0, %c0_0] : memref<128x256xf32, #tpu.memory_space<vmem>>, vector<128x256xf32>
    %cst = arith.constant dense<0xFF800000> : vector<128xf32>
    %1 = vector.multi_reduction <maximumf>, %0, %cst [1] : vector<128x256xf32> to vector<128xf32>
    %2 = vector.shape_cast %1 : vector<128xf32> to vector<128x1xf32>
    %3 = vector.broadcast %2 : vector<128x1xf32> to vector<128x256xf32>
    %4 = arith.subf %0, %3 : vector<128x256xf32>
    %5 = math.exp %4 : vector<128x256xf32>
    %cst_1 = arith.constant dense<0.000000e+00> : vector<128xf32>
    %6 = vector.multi_reduction <add>, %5, %cst_1 [1] : vector<128x256xf32> to vector<128xf32>
    %7 = vector.shape_cast %6 : vector<128xf32> to vector<128x1xf32>
    %8 = math.log %7 : vector<128x1xf32>
    %9 = arith.addf %8, %2 : vector<128x1xf32>
    %c0_2 = arith.constant 0 : index
    %c0_3 = arith.constant 0 : index
    %10 = vector.load %arg2[%c0_2, %c0_3] : memref<128x128xf32, #tpu.memory_space<vmem>>, vector<128x128xf32>
    %11 = tpu.iota {dimensions = array<i32: 0>} : vector<128x128xi32>
    %12 = tpu.iota {dimensions = array<i32: 1>} : vector<128x128xi32>
    %13 = arith.cmpi eq, %11, %12 : vector<128x128xi32>
    %cst_4 = arith.constant 0.000000e+00 : f32
    %14 = vector.broadcast %cst_4 : f32 to vector<128x128xf32>
    %15 = arith.select %13, %10, %14 : vector<128x128xi1>, vector<128x128xf32>
    %cst_5 = arith.constant dense<0.000000e+00> : vector<128xf32>
    %16 = vector.multi_reduction <add>, %15, %cst_5 [1] : vector<128x128xf32> to vector<128xf32>
    %17 = vector.shape_cast %16 : vector<128xf32> to vector<128x1xf32>
    %18 = arith.subf %9, %17 : vector<128x1xf32>
    %19 = vector.shape_cast %18 : vector<128x1xf32> to vector<1x128x1xf32>
    %cst_6 = arith.constant dense<0.000000e+00> : vector<1xf32>
    %20 = vector.multi_reduction <add>, %19, %cst_6 [1, 2] : vector<1x128x1xf32> to vector<1xf32>
    %21 = vector.shape_cast %20 : vector<1xf32> to vector<1x1x1xf32>
    %22 = vector.extract %21[0, 0, 0] : f32 from vector<1x1x1xf32>
    %23 = vector.broadcast %22 : f32 to vector<8x128xf32>
    %c0_7 = arith.constant 0 : index
    %c0_8 = arith.constant 0 : index
    %24 = vector.load %arg3[%c0_7, %c0_8] : memref<8x128xf32, #tpu.memory_space<vmem>>, vector<8x128xf32>
    tpu.vector_store %arg3[%c0_7, %c0_8], %23 {strides = array<i32>} : memref<8x128xf32, #tpu.memory_space<vmem>>, vector<8x128xf32>,
    return
  }
  func.func @transform_0(%arg0: i32) -> (i32, i32) {
    %c0_i32 = arith.constant 0 : i32
    %c0_i32_0 = arith.constant 0 : i32
    return %arg0, %c0_i32 : i32, i32
  }
  func.func @transform_1(%arg0: i32) -> (i32, i32) {
    %c0_i32 = arith.constant 0 : i32
    return %arg0, %arg0 : i32, i32
  }
  func.func @transform_2(%arg0: i32) -> (i32, i32) {
    %c0_i32 = arith.constant 0 : i32
    %c0_i32_0 = arith.constant 0 : i32
    return %c0_i32, %arg0 : i32, i32
  }
}

</mosaic_0001>

<bundles_post_ra>
// kernel: tpu_custom_call.1
= control target key start
LH: loop header
LB: loop body
LE: loop exit
PB: predicated region body
PF: predicated region fallthrough
CT: control target
= control target key end

     0   :  { %s1674_s0 = inlined_call_operand.hbm [shape: f32[256,256], index: 0, kind: input, shape index: {}]   ;;  %s1675_s1 = inlined_call_operand.hbm [shape: f32[256,256], index: 1, kind: input, shape index: {}]   ;;  %s1676_s2 = inlined_call_operand.hbm [shape: f32[8,256], index: 2, kind: output, shape index: {}]  }
   0x1   :  { %1681 = sst [smem:[#allocation11_spill]] %s1674_s0 }
   0x2   :  { %7 = vsyncpa [#allocation3], 0 }
   0x3   :  { %9 = vsyncpa [#allocation3 + $0x1], 0 }
   0x4   :  { %10 = vsyncpa [#allocation6], 0 }
   0x5   :  { %12 = vsyncpa [#allocation6 + $0x1], 0 }
   0x6   :  { %13 = vsyncpa [#allocation4], 0 }
   0x7   :  { %15 = vsyncpa [#allocation4 + $0x1], 0  ;;  %s1128_s9 = smov 0   ;;  %s1130_s10 = smov 0  }
   0x8   :  { %s1132_s11 = smov 0   ;;  %s1134_s12 = smov 0  }
   0x9   :  { %s1136_s13 = smov 0   ;;  %s1138_s14 = smov 0  }
   0xa   :  { %s1140_s15 = smov 0  }
   0xb LB: > { %s1164_s16 = sadd.s32 4294967295, %s1107_s15   ;;  %s754_s17 = sadd.s32 4294967294, %s1107_s15   ;;  %s1107_s15 = sphi %s1140_s15, %s1704_s15   ;;  %s1103_s14 = sphi %s1138_s14, %s1703_s14   ;;  %s1099_s13 = sphi %s1136_s13, %s1702_s13   ;;  %s1095_s12 = sphi %s1134_s12, %s1701_s12   ;;  %s1091_s11 = sphi %s1132_s11, %s1700_s11   ;;  %s1087_s10 = sphi %s1130_s10, %s1699_s10   ;;  %s1083_s9 = sphi %s1128_s9, %s1698_s9  }
   0xc   : > { %s1168_s18 = sadd.s32 1, %s1107_s15   ;;  %s28_s19 = sadd.s32 1, %s1103_s14 }
   0xd   : > { %s25_s20 = ssub.s32 %s1107_s15, %s1168_s18  ;;  %p35_p0 = scmp.ne.s32.totalorder %s1103_s14, %s1099_s13 }
   0xe   : > { %p26_p1 = scmp.eq.s32.totalorder %s25_s20, 0  ;;  %p1679_p2 = scmp.eq.s32.totalorder %s1107_s15, 0 }
   0xf   : > { %p41_p3 = scmp.ne.s32.totalorder %s1099_s13, %s1095_s12  ;;  %p1677_p4 = scmp.eq.s32.totalorder %s1164_s16, 0 }
  0x10   : > { %s1180_s21 = scalar_select %p26_p1, %s1103_s14, %s28_s19  }
  0x11   : > { %p1184_p5 = por %p1679_p2, %p35_p0  ;;  %p1190_p6 = por %p1677_p4, %p41_p3 }
  0x12   : > { %s53_s24 = sor.u32 %s25_s20, %s25_s20  ;;  %p93_p7 = scmp.eq.s32.totalorder %s1164_s16, 1 }
  0x13   : > { %p1195_p8 = scmp.eq.s32.totalorder %s53_s24, 0  ;;  %p99_p9 = scmp.eq.s32.totalorder %s754_s17, 1 }
  0x14   : > { %p1199_p10 = por %p93_p7, %p35_p0  ;;  %p1678_p13 = scmp.lt.s32.totalorder %s1107_s15, 2 }
  0x15   : > { %p1204_p12 = por %p99_p9, %p41_p3  ;;  %s119_s28 = sand.u32 1, %s1103_s14  }
  0x16   : > { %s774_s29 = sshll.u32 %s1107_s15, 8  ;;  %s757_s30 = sshll.u32 %s119_s28, 8 }
  0x17   : > { %s1687_s0 = sld [smem:[#allocation11_spill]]  ;;  %s123_s7 = scalar_lea.vmem [#allocation2], %s757_s30 }
  0x18   : > { %s132_s8 = sshll.u32 %s123_s7, 4  ;;  %p1218_p0 = pnand %p1678_p13, %p1184_p5  ;;  %s133_s8 = int_to_ptr.vmem [resolvable:$true] %s132_s8 }
  0x19   : > { %p164_p3 = scmp.lt.s32.totalorder %s1107_s15, 3  ;;  %s120_s19 = scalar_lea.sflag [#allocation3], %s119_s28 }
  0x1a   : > { %p957_p9 = pneg %p1218_p0 }
  0x1d   : > { %s129_s5 = scalar_lea.hbm %s1687_s0, %s774_s29  ;;  %s960_s22 = scalar_lea.hbm %s1687_s0, 512 }
  0x1e   : > { %s130_s6 = sshll.u32 %s129_s5, 4  ;;  %s131_s6 = int_to_ptr.hbm [resolvable:$true] %s130_s6 }
  0x1f   : > { %s953_s20 = sshra.s32 %s131_s6, 4  ;;  %s954_s20 = int_to_ptr.hbm [resolvable:$true] %s953_s20 }
  0x20   : > { %s955_s24 = scalar_lea.hbm %s954_s20, 256  ;;  %p961_p5 = scmp.lt.s32.totalorder %s954_s20, %s1687_s0 }
  0x21   : > { %p956_p7 = scmp.ne.s32.totalorder %s954_s20, %s955_s24  ;;  %p962_p13 = scmp.lt.s32.totalorder %s960_s22, %s955_s24 }
  0x23   : > { %p958_p11 = pnand %p957_p9, %p956_p7  ;;  %p963_p2 = por %p962_p13, %p961_p5 }
  0x25   : > { %p959_p4 = pneg %p958_p11 }
  0x27   : > { %p964_p1 = pnand %p963_p2, %p959_p4 }
  0x29   : > { %967 = shalt.err (!%p964_p1)
}
  0x2a   : > { %s1680_s28 = smov 256   ;;  %s1110_s5 = smov 16  }
  0x2b   : > { %787 = dma.hbm_to_vmem [thread:$0]  (!%p1218_p0), %s131_s6, 4096, %s133_s8, %s120_s19, %s1680_s28, %s1680_s28, %s1110_s5  }
  0x2c   : > { %p1689_p2 = scmp.ge.s32.totalorder %s1107_s15, 1  ;;  %s56_s20 = sadd.s32 1, %s1091_s11 }
  0x2d   : > { %s1248_s24 = scalar_select %p1195_p8, %s1091_s11, %s56_s20  }
  0x2e   : > { %p1240_p4 = pnand %p1689_p2, %p164_p3  ;;  %p63_p11 = scmp.ne.s32.totalorder %s1091_s11, %s1087_s10 }
  0x2f   : > { %p69_p13 = scmp.ne.s32.totalorder %s1087_s10, %s1083_s9  ;;  %s142_s29 = sand.u32 1, %s1091_s11  }
  0x30   : > { %s775_s30 = sshll.u32 %s1107_s15, 5  ;;  %p1691_p1 = scmp.eq.s32.totalorder %s1107_s15, 0 }
  0x31   : > { %p1692_p9 = scmp.eq.s32.totalorder %s1164_s16, 0  ;;  %s761_s8 = sshll.u32 %s142_s29, 7 }
  0x32   : > { %p65_p7 = por %p63_p11, %p1691_p1  ;;  %s151_s17 = sadd.s32 %s1107_s15, %s775_s30 }
  0x33   : > { %p1260_p5 = por %p69_p13, %p1692_p9  ;;  %s764_s19 = sshll.u32 %s151_s17, 3 }
  0x34   : > { %s146_s22 = scalar_lea.vmem [#allocation5], %s761_s8  ;;  %s153_s5 = scalar_lea.hbm %s1675_s1, %s764_s19 }
  0x35   : > { %s156_s3 = sshll.u32 %s146_s22, 4  ;;  %s154_s9 = sshll.u32 %s153_s5, 4  ;;  %s157_s3 = int_to_ptr.vmem [resolvable:$true] %s156_s3  ;;  %s155_s9 = int_to_ptr.hbm [resolvable:$true] %s154_s9 }
  0x36   : > { %p1694_p8 = scmp.lt.s32.totalorder %s1107_s15, 2  ;;  %s143_s28 = scalar_lea.sflag [#allocation6], %s142_s29 }
  0x37   : > { %s983_s0 = sshra.s32 %s155_s9, 4  ;;  %s990_s19 = scalar_lea.hbm %s1675_s1, 512  ;;  %s984_s0 = int_to_ptr.hbm [resolvable:$true] %s983_s0 }
  0x38   : > { %p1270_p0 = pnand %p1694_p8, %p65_p7  ;;  %s985_s30 = scalar_lea.hbm %s984_s0, 128 }
  0x39   : > { %p986_p3 = scmp.ne.s32.totalorder %s984_s0, %s985_s30  ;;  %p991_p1 = scmp.lt.s32.totalorder %s984_s0, %s1675_s1 }
  0x3a   : > { %p987_p2 = pneg %p1270_p0  ;;  %p992_p7 = scmp.lt.s32.totalorder %s990_s19, %s985_s30 }
  0x3c   : > { %p988_p11 = pnand %p987_p2, %p986_p3  ;;  %p993_p9 = por %p992_p7, %p991_p1 }
  0x3e   : > { %p989_p13 = pneg %p988_p11 }
  0x40   : > { %p994_p8 = pnand %p993_p9, %p989_p13 }
  0x42   : > { %997 = shalt.err (!%p994_p8)
}
  0x43   : > { %s1111_s29 = smov 128   ;;  %s1112_s4 = smov 8  }
  0x44   : > { %s1696_s5 = smov 256   ;;  %168 = sbr.rel (%p1240_p4) target bundleno = 575 (0x23f), region = 28 }
  0x45   : > { %790 = dma.hbm_to_vmem [thread:$0]  (!%p1270_p0), %s155_s9, 2048, %s157_s3, %s143_s28, %s1696_s5, %s1111_s29, %s1112_s4  }
  0x46   : > { %s1288_s8 = sand.u32 (!%p1240_p4), 1, %s1099_s13  }
  0x47   : > { %s766_s0 = sshll.u32 (!%p1240_p4), %s1288_s8, 8  ;;  %s171_s30 = scalar_lea.sflag (!%p1240_p4), [#allocation3], %s1288_s8 }
  0x48   : > { %s1292_s17 = scalar_lea.vmem (!%p1240_p4), [#allocation2], %s766_s0 }
  0x49   : > { %1070 = dma.done.wait (%p1190_p6), %s171_s30, 4096  }
  0x4a   : > { %1072 = vsyncadd (%p1190_p6), %s171_s30, 4294963200  ;;  %s180_s28 = sand.u32 1, %s1087_s10  }
  0x4b   : > { %s767_s7 = sshll.u32 %s180_s28, 7  ;;  %s181_s3 = scalar_lea.sflag [#allocation6], %s180_s28 }
  0x4c   : > { %s1299_s9 = scalar_lea.vmem [#allocation5], %s767_s7 }
  0x4d   : > { %1074 = dma.done.wait (%p1260_p5), %s181_s3, 2048  }
  0x4e   : > { %1076 = vsyncadd (%p1260_p5), %s181_s3, 4294965248  ;;  %v1306_v0 = vld [vmem:[%s1292_s17 + $0x40] sm:$0xff]  ;;  %v1309_v1 = vld [vmem:[%s1292_s17 + $0x48] sm:$0xff]  ;;  %v501_v36 = vlaneseq  ;;  %s768_s23 = sshll.u32 %s1288_s8, 3  ;;  %s770_s6 = sshll.u32 %s1164_s16, 3 }
  0x4f   : > { %v1312_v2 = vld [vmem:[%s1292_s17 + $0x20] sm:$0xff]  ;;  %v257_v3 = vmax.f32 %v1306_v0, %v1309_v1  ;;  %v1317_v4 = vld [vmem:[%s1292_s17 + $0x28] sm:$0xff]  ;;  %v1330_v9 = vld [vmem:[%s1292_s17 + $0x50] sm:$0xff]  ;;  %s654_s22 = scalar_lea.hbm %s1676_s2, %s770_s6  ;;  %s210_s25 = scalar_lea.vmem [#allocation7], %s768_s23 }
  0x50   : > { %v1320_v5 = vld [vmem:[%s1292_s17] sm:$0xff]  ;;  %v1323_v6 = vld [vmem:[%s1292_s17 + $0x8] sm:$0xff]  ;;  %v251_v7 = vmax.f32 %v1312_v2, %v1317_v4  ;;  %v1333_v10 = vld [vmem:[%s1292_s17 + $0x58] sm:$0xff]  ;;  %v1419_v43 = vshrl.u32 %v501_v36, 7  ;;  %v1427_v47 = vand.u32 127, %v501_v36  ;;  %s656_s29 = sshll.u32 %s210_s25, 4  ;;  %s657_s29 = int_to_ptr.vmem [resolvable:$true] %s656_s29 }
  0x51   : > { %v245_v8 = vmax.f32 %v1320_v5, %v1323_v6  ;;  %258 = vmax.xlane.f32.xlu2 %v257_v3  ;;  %v1336_v11 = vld [vmem:[%s1292_s17 + $0x30] sm:$0xff]  ;;  %v1339_v12 = vld [vmem:[%s1292_s17 + $0x38] sm:$0xff]  ;;  %v260_v15 = vmax.f32 %v1330_v9, %v1333_v10  ;;  %v1354_v18 = vld [vmem:[%s1292_s17 + $0x80] sm:$0xff]  ;;  %s658_s4 = sshll.u32 %s654_s22, 4  ;;  %s644_s0 = scalar_lea.sflag [#allocation4], %s1288_s8  ;;  %s659_s4 = int_to_ptr.hbm [resolvable:$true] %s658_s4 }
  0x52   : > { %252 = vmax.xlane.f32.xlu1 %v251_v7  ;;  %v1342_v13 = vld [vmem:[%s1292_s17 + $0x10] sm:$0xff]  ;;  %v1345_v14 = vld [vmem:[%s1292_s17 + $0x18] sm:$0xff]  ;;  %v254_v16 = vmax.f32 %v1336_v11, %v1339_v12  ;;  %v1357_v19 = vld [vmem:[%s1292_s17 + $0x88] sm:$0xff]  ;;  %v505_v48 = vadd.s32 24, %v1419_v43  ;;  %vm520_vm0 = vcmp.eq.s32.totalorder %v1419_v43, %v1427_v47  ;;  %v504_v56 = vadd.s32 16, %v1419_v43  ;;  %s1027_s30 = sshra.s32 %s659_s4, 4  ;;  %s1028_s30 = int_to_ptr.hbm [resolvable:$true] %s1027_s30 }
  0x53   : > { %246 = vmax.xlane.f32.xlu0 %v245_v8  ;;  %v248_v17 = vmax.f32 %v1342_v13, %v1345_v14  ;;  %v1360_v20 = vld [vmem:[%s1292_s17 + $0x60] sm:$0xff]  ;;  %v1363_v21 = vld [vmem:[%s1292_s17 + $0x68] sm:$0xff]  ;;  %v1366_v22 = vld [vmem:[%s1292_s17 + $0x70] sm:$0xff]  ;;  %v269_v24 = vmax.f32 %v1354_v18, %v1357_v19  ;;  %v503_v57 = vadd.s32 8, %v1419_v43  ;;  %v508_v58 = vadd.s32 48, %v1419_v43  ;;  %s1033_s7 = scalar_lea.hbm %s1676_s2, 16  ;;  %p1034_p0 = scmp.lt.s32.totalorder %s1028_s30, %s1676_s2 }
  0x54   : > { %v1369_v23 = vld [vmem:[%s1292_s17 + $0x78] sm:$0xff]  ;;  %v263_v25 = vmax.f32 %v1360_v20, %v1363_v21  ;;  %v1378_v27 = vld [vmem:[%s1292_s17 + $0xb0] sm:$0xff]  ;;  %v1390_v31 = vld [vmem:[%s1292_s17 + $0xa0] sm:$0xff]  ;;  %vm523_vm1 = vcmp.eq.s32.totalorder %v505_v48, %v1427_v47  ;;  %vm522_vm2 = vcmp.eq.s32.totalorder %v504_v56, %v1427_v47  ;;  %v506_v7 = vadd.s32 32, %v1419_v43 }
  0x55   : > { %v266_v26 = vmax.f32 %v1366_v22, %v1369_v23  ;;  %v1381_v28 = vld [vmem:[%s1292_s17 + $0xb8] sm:$0xff]  ;;  %v1384_v29 = vld [vmem:[%s1292_s17 + $0x90] sm:$0xff]  ;;  %v1393_v32 = vld [vmem:[%s1292_s17 + $0xa8] sm:$0xff]  ;;  %vm521_vm3 = vcmp.eq.s32.totalorder %v503_v57, %v1427_v47  ;;  %vm526_vm4 = vcmp.eq.s32.totalorder %v508_v58, %v1427_v47 }
  0x56   : > { %v1387_v30 = vld [vmem:[%s1292_s17 + $0x98] sm:$0xff]  ;;  %v278_v33 = vmax.f32 %v1378_v27, %v1381_v28  ;;  %v275_v35 = vmax.f32 %v1390_v31, %v1393_v32  ;;  %v1402_v37 = vld [vmem:[%s1292_s17 + $0xe0] sm:$0xff]  ;;  %v1405_v38 = vld [vmem:[%s1292_s17 + $0xe8] sm:$0xff]  ;;  %vm524_vm5 = vcmp.eq.s32.totalorder %v506_v7, %v1427_v47 }
  0x57   : > { %v272_v34 = vmax.f32 %v1384_v29, %v1387_v30  ;;  %v1408_v39 = vld [vmem:[%s1292_s17 + $0xc0] sm:$0xff]  ;;  %v1411_v40 = vld [vmem:[%s1292_s17 + $0xc8] sm:$0xff]  ;;  %v1414_v41 = vld [vmem:[%s1292_s17 + $0xd0] sm:$0xff]  ;;  %v287_v44 = vmax.f32 %v1402_v37, %v1405_v38 }
  0x58   : > { %v1417_v42 = vld [vmem:[%s1292_s17 + $0xd8] sm:$0xff]  ;;  %v281_v45 = vmax.f32 %v1408_v39, %v1411_v40  ;;  %v1431_v49 = vld [vmem:[%s1292_s17 + $0xf0] sm:$0xff]  ;;  %v485_v51 = vld [vmem:[%s1299_s9] sm:$0xff] }
  0x59   : > { %261 = vmax.xlane.f32.xlu2 %v260_v15  ;;  %v284_v46 = vmax.f32 %v1414_v41, %v1417_v42  ;;  %v1434_v50 = vld [vmem:[%s1292_s17 + $0xf8] sm:$0xff]  ;;  %v536_v54 = vsel %vm520_vm0, %v485_v51, 0.0  ;;  %v487_v59 = vld [vmem:[%s1299_s9 + $0x10] sm:$0xff]  ;;  %v486_v60 = vld [vmem:[%s1299_s9 + $0x8] sm:$0xff]  ;;  %vm600_vm0 = vcmask 7168   ;;  %s1029_s17 = scalar_lea.hbm %s1028_s30, 8 }
  0x5a   : > { %255 = vmax.xlane.f32.xlu1 %v254_v16  ;;  %v488_v52 = vld [vmem:[%s1299_s9 + $0x18] sm:$0xff]  ;;  %v290_v53 = vmax.f32 %v1431_v49, %v1434_v50  ;;  %v491_v61 = vld [vmem:[%s1299_s9 + $0x30] sm:$0xff]  ;;  %v538_v62 = vsel %vm522_vm2, %v487_v59, 0.0  ;;  %v537_v63 = vsel %vm521_vm3, %v486_v60, 0.0  ;;  %v489_v8 = vld [vmem:[%s1299_s9 + $0x20] sm:$0xff]  ;;  %v507_v16 = vadd.s32 40, %v1419_v43  ;;  %p1030_p6 = scmp.ne.s32.totalorder %s1028_s30, %s1029_s17  ;;  %p1035_p3 = scmp.lt.s32.totalorder %s1033_s7, %s1029_s17 }
  0x5b   : > { %249 = vmax.xlane.f32.xlu0 %v248_v17  ;;  %v539_v55 = vsel %vm523_vm1, %v488_v52, 0.0  ;;  %v542_v3 = vsel %vm526_vm4, %v491_v61, 0.0  ;;  %v540_v15 = vsel %vm524_vm5, %v489_v8, 0.0  ;;  %v511_v17 = vadd.s32 72, %v1419_v43 }
  0x5c   : > { %vm525_vm6 = vcmp.eq.s32.totalorder %v507_v16, %v1427_v47  ;;  %p1031_p4 = pnand %p1030_p6, %p1199_p10  ;;  %p1036_p2 = por %p1035_p3, %p1034_p0 }
  0x5d   : > { %vm529_vm7 = vcmp.eq.s32.totalorder %v511_v17, %v1427_v47 }
  0x5e   : > { %p1032_p5 = pneg %p1031_p4 }
  0x60   : > { %p1037_p11 = pnand %p1036_p2, %p1032_p5 }
  0x61   : > { %270 = vmax.xlane.f32.xlu2 %v269_v24  ;;  %v509_v24 = vadd.s32 56, %v1419_v43 }
  0x62   : > { %267 = vmax.xlane.f32.xlu1 %v266_v26  ;;  %v494_v26 = vld [vmem:[%s1299_s9 + $0x48] sm:$0xff] }
  0x63   : > { %264 = vmax.xlane.f32.xlu0 %v263_v25  ;;  %v490_v25 = vld [vmem:[%s1299_s9 + $0x28] sm:$0xff]  ;;  %vm527_vm8 = vcmp.eq.s32.totalorder %v509_v24, %v1427_v47 }
  0x69   : > { %279 = vmax.xlane.f32.xlu2 %v278_v33  ;;  %v492_v33 = vld [vmem:[%s1299_s9 + $0x38] sm:$0xff] }
  0x6a   : > { %276 = vmax.xlane.f32.xlu1 %v275_v35  ;;  %v545_v35 = vsel %vm529_vm7, %v494_v26, 0.0  ;;  %v543_v36 = vsel %vm527_vm8, %v492_v33, 0.0 }
  0x6b   : > { %273 = vmax.xlane.f32.xlu0 %v272_v34  ;;  %v541_v34 = vsel %vm525_vm6, %v490_v25, 0.0 }
  0x71   : > { %288 = vmax.xlane.f32.xlu2 %v287_v44  ;;  %v510_v44 = vadd.s32 64, %v1419_v43 }
  0x72   : > { %285 = vmax.xlane.f32.xlu1 %v284_v46 }
  0x73   : > { %282 = vmax.xlane.f32.xlu0 %v281_v45  ;;  %v493_v45 = vld [vmem:[%s1299_s9 + $0x40] sm:$0xff]  ;;  %vm528_vm9 = vcmp.eq.s32.totalorder %v510_v44, %v1427_v47 }
  0x74   : > { %v544_v46 = vsel %vm528_vm9, %v493_v45, 0.0 }
  0x79   : > { %552 = vadd.xlane.f32.xlu2 %v536_v54 }
  0x7a   : > { %558 = vadd.xlane.f32.xlu1 %v539_v55 }
  0x7b   : > { %291 = vmax.xlane.f32.xlu0 %v290_v53 }
  0x81   : > { %556 = vadd.xlane.f32.xlu2 %v538_v62 }
  0x82   : > { %564 = vadd.xlane.f32.xlu1 %v542_v3 }
  0x83   : > { %554 = vadd.xlane.f32.xlu0 %v537_v63 }
  0x89   : > { %562 = vadd.xlane.f32.xlu2 %v541_v34 }
  0x8a   : > { %570 = vadd.xlane.f32.xlu1 %v545_v35 }
  0x8b   : > { %560 = vadd.xlane.f32.xlu0 %v540_v15 }
  0x91   : > { %568 = vadd.xlane.f32.xlu2 %v544_v46 }
  0x93   : > { %566 = vadd.xlane.f32.xlu0 %v543_v36 }
  0xc4   : > { %v1467_v48 = vpop.xlane.xlu2 %258 }
  0xc5   : > { %v1469_v51 = vpop.xlane.xlu1 %252  ;;  %v302_v15 = vsub.f32 %v1309_v1, %v1467_v48 }
  0xc6   : > { %v1471_v52 = vpop.xlane.xlu0 %246  ;;  %v297_v53 = vsub.f32 %v1312_v2, %v1469_v51  ;;  %v298_v54 = vsub.f32 %v1317_v4, %v1469_v51 }
  0xc7   : > { %v293_v55 = vsub.f32 %v1320_v5, %v1471_v52  ;;  %v294_v56 = vsub.f32 %v1323_v6, %v1471_v52  ;;  %v343_v34 = vmul.f32 1.442695, %v302_v15 }
  0xc8   : > { %v333_v57 = vmul.f32 1.442695, %v297_v53  ;;  %v335_v58 = vmul.f32 1.442695, %v298_v54 }
  0xc9   : > { %v325_v59 = vmul.f32 1.442695, %v293_v55  ;;  %v327_v60 = vmul.f32 1.442695, %v294_v56 }
  0xca   : > { %857 = vpow2.f32 %v333_v57 }
  0xcb   : > { %859 = vpow2.f32 %v335_v58 }
  0xcc   : > { %v1481_v61 = vpop.xlane.xlu2 %261  ;;  %861 = vpow2.f32 %v325_v59 }
  0xcd   : > { %v303_v2 = vsub.f32 %v1330_v9, %v1481_v61  ;;  %v304_v4 = vsub.f32 %v1333_v10, %v1481_v61  ;;  %v1487_v62 = vpop.xlane.xlu1 %255  ;;  %863 = vpow2.f32 %v327_v60  ;;  %v301_v9 = vsub.f32 %v1306_v0, %v1467_v48 }
  0xce   : > { %v1489_v5 = vpop.xlane.xlu0 %249  ;;  %v299_v6 = vsub.f32 %v1336_v11, %v1487_v62  ;;  %v300_v63 = vsub.f32 %v1339_v12, %v1487_v62 }
  0xcf   : > { %v295_v3 = vsub.f32 %v1342_v13, %v1489_v5  ;;  %v345_v7 = vmul.f32 1.442695, %v303_v2  ;;  %v347_v8 = vmul.f32 1.442695, %v304_v4  ;;  %v296_v10 = vsub.f32 %v1345_v14, %v1489_v5 }
  0xd0   : > { %v337_v16 = vmul.f32 1.442695, %v299_v6  ;;  %v339_v17 = vmul.f32 1.442695, %v300_v63  ;;  %v858_v11 = vpop.eup %857  ;;  %v341_v26 = vmul.f32 1.442695, %v301_v9 }
  0xd1   : > { %865 = vpow2.f32 %v345_v7  ;;  %v329_v24 = vmul.f32 1.442695, %v295_v3  ;;  %v860_v12 = vpop.eup %859  ;;  %v331_v25 = vmul.f32 1.442695, %v296_v10 }
  0xd2   : > { %867 = vpow2.f32 %v347_v8  ;;  %v862_v13 = vpop.eup %861  ;;  %v395_v0 = vadd.f32 %v860_v12, %v858_v11 }
  0xd3   : > { %869 = vpow2.f32 %v337_v16  ;;  %v864_v33 = vpop.eup %863 }
  0xd4   : > { %871 = vpow2.f32 %v339_v17  ;;  %v1503_v35 = vpop.xlane.xlu2 %270  ;;  %396 = vadd.xlane.f32.xlu0 %v395_v0  ;;  %v389_v1 = vadd.f32 %v864_v33, %v862_v13 }
  0xd5   : > { %873 = vpow2.f32 %v329_v24  ;;  %v309_v14 = vsub.f32 %v1354_v18, %v1503_v35  ;;  %v310_v36 = vsub.f32 %v1357_v19, %v1503_v35  ;;  %v1511_v45 = vpop.xlane.xlu1 %267 }
  0xd6   : > { %v1509_v44 = vpop.xlane.xlu0 %264  ;;  %875 = vpow2.f32 %v331_v25  ;;  %390 = vadd.xlane.f32.xlu1 %v389_v1  ;;  %v307_v18 = vsub.f32 %v1366_v22, %v1511_v45  ;;  %v308_v59 = vsub.f32 %v1369_v23, %v1511_v45 }
  0xd7   : > { %v305_v46 = vsub.f32 %v1360_v20, %v1509_v44  ;;  %v306_v53 = vsub.f32 %v1363_v21, %v1509_v44  ;;  %v866_v54 = vpop.eup %865  ;;  %877 = vpow2.f32 %v341_v26  ;;  %v357_v55 = vmul.f32 1.442695, %v309_v14 }
  0xd8   : > { %v359_v56 = vmul.f32 1.442695, %v310_v36  ;;  %v868_v19 = vpop.eup %867  ;;  %879 = vpow2.f32 %v343_v34  ;;  %v353_v6 = vmul.f32 1.442695, %v307_v18  ;;  %v355_v22 = vmul.f32 1.442695, %v308_v59 }
  0xd9   : > { %v349_v57 = vmul.f32 1.442695, %v305_v46  ;;  %v351_v58 = vmul.f32 1.442695, %v306_v53  ;;  %v870_v60 = vpop.eup %869  ;;  %881 = vpow2.f32 %v357_v55  ;;  %v404_v20 = vadd.f32 %v868_v19, %v866_v54 }
  0xda   : > { %v872_v2 = vpop.eup %871  ;;  %883 = vpow2.f32 %v359_v56 }
  0xdb   : > { %v874_v21 = vpop.eup %873  ;;  %885 = vpow2.f32 %v349_v57  ;;  %v398_v4 = vadd.f32 %v872_v2, %v870_v60 }
  0xdc   : > { %v876_v63 = vpop.eup %875  ;;  %887 = vpow2.f32 %v351_v58  ;;  %v1521_v3 = vpop.xlane.xlu2 %279  ;;  %405 = vadd.xlane.f32.xlu0 %v404_v20 }
  0xdd   : > { %v878_v9 = vpop.eup %877  ;;  %v392_v7 = vadd.f32 %v876_v63, %v874_v21  ;;  %v315_v23 = vsub.f32 %v1378_v27, %v1521_v3  ;;  %v316_v8 = vsub.f32 %v1381_v28, %v1521_v3  ;;  %v1529_v15 = vpop.xlane.xlu1 %276  ;;  %889 = vpow2.f32 %v353_v6 }
  0xde   : > { %v1527_v10 = vpop.xlane.xlu0 %273  ;;  %v880_v16 = vpop.eup %879  ;;  %399 = vadd.xlane.f32.xlu1 %v398_v4  ;;  %v313_v27 = vsub.f32 %v1390_v31, %v1529_v15  ;;  %891 = vpow2.f32 %v355_v22  ;;  %v314_v0 = vsub.f32 %v1393_v32, %v1529_v15 }
  0xdf   : > { %v311_v17 = vsub.f32 %v1384_v29, %v1527_v10  ;;  %v312_v11 = vsub.f32 %v1387_v30, %v1527_v10  ;;  %v882_v24 = vpop.eup %881  ;;  %393 = vadd.xlane.f32.xlu2 %v392_v7  ;;  %v369_v12 = vmul.f32 1.442695, %v315_v23  ;;  %v371_v25 = vmul.f32 1.442695, %v316_v8 }
  0xe0   : > { %v884_v28 = vpop.eup %883  ;;  %v365_v1 = vmul.f32 1.442695, %v313_v27  ;;  %v367_v36 = vmul.f32 1.442695, %v314_v0  ;;  %v401_v46 = vadd.f32 %v880_v16, %v878_v9 }
  0xe1   : > { %v361_v13 = vmul.f32 1.442695, %v311_v17  ;;  %v363_v26 = vmul.f32 1.442695, %v312_v11  ;;  %v886_v29 = vpop.eup %885  ;;  %893 = vpow2.f32 %v369_v12  ;;  %v413_v33 = vadd.f32 %v884_v28, %v882_v24 }
  0xe2   : > { %v888_v30 = vpop.eup %887  ;;  %895 = vpow2.f32 %v371_v25 }
  0xe3   : > { %897 = vpow2.f32 %v361_v13  ;;  %v407_v34 = vadd.f32 %v888_v30, %v886_v29  ;;  %v890_v31 = vpop.eup %889 }
  0xe4   : > { %899 = vpow2.f32 %v363_v26  ;;  %v1539_v14 = vpop.xlane.xlu2 %288  ;;  %414 = vadd.xlane.f32.xlu0 %v413_v33  ;;  %v892_v56 = vpop.eup %891  ;;  %v495_v26 = vld [vmem:[%s1299_s9 + $0x50] sm:$0xff] }
  0xe5   : > { %v321_v53 = vsub.f32 %v1402_v37, %v1539_v14  ;;  %v322_v32 = vsub.f32 %v1405_v38, %v1539_v14  ;;  %v1547_v55 = vpop.xlane.xlu1 %285  ;;  %901 = vpow2.f32 %v365_v1  ;;  %v410_v4 = vadd.f32 %v892_v56, %v890_v31 }
  0xe6   : > { %v1545_v54 = vpop.xlane.xlu0 %282  ;;  %408 = vadd.xlane.f32.xlu1 %v407_v34  ;;  %903 = vpow2.f32 %v367_v36  ;;  %v319_v20 = vsub.f32 %v1414_v41, %v1547_v55  ;;  %v515_v1 = vadd.s32 104, %v1419_v43  ;;  %v513_v36 = vadd.s32 88, %v1419_v43 }
  0xe7   : > { %v317_v18 = vsub.f32 %v1408_v39, %v1545_v54  ;;  %v318_v19 = vsub.f32 %v1411_v40, %v1545_v54  ;;  %v894_v57 = vpop.eup %893  ;;  %402 = vadd.xlane.f32.xlu2 %v401_v46  ;;  %v381_v58 = vmul.f32 1.442695, %v321_v53  ;;  %v383_v59 = vmul.f32 1.442695, %v322_v32  ;;  %v498_v46 = vld [vmem:[%s1299_s9 + $0x68] sm:$0xff]  ;;  %v496_v53 = vld [vmem:[%s1299_s9 + $0x58] sm:$0xff] }
  0xe8   : > { %v896_v37 = vpop.eup %895  ;;  %v320_v39 = vsub.f32 %v1417_v42, %v1547_v55  ;;  %v377_v63 = vmul.f32 1.442695, %v319_v20  ;;  %v514_v31 = vadd.s32 96, %v1419_v43  ;;  %vm533_vm11 = vcmp.eq.s32.totalorder %v515_v1, %v1427_v47  ;;  %v497_v32 = vld [vmem:[%s1299_s9 + $0x60] sm:$0xff] }
  0xe9   : > { %v373_v38 = vmul.f32 1.442695, %v317_v18  ;;  %v375_v60 = vmul.f32 1.442695, %v318_v19  ;;  %v898_v2 = vpop.eup %897  ;;  %905 = vpow2.f32 %v381_v58  ;;  %v422_v21 = vadd.f32 %v896_v37, %v894_v57  ;;  %v500_v37 = vld [vmem:[%s1299_s9 + $0x78] sm:$0xff] }
  0xea   : > { %v900_v40 = vpop.eup %899  ;;  %907 = vpow2.f32 %v383_v59  ;;  %v379_v9 = vmul.f32 1.442695, %v320_v39  ;;  %vm531_vm12 = vcmp.eq.s32.totalorder %v513_v36, %v1427_v47  ;;  %vm532_vm13 = vcmp.eq.s32.totalorder %v514_v31, %v1427_v47  ;;  %v499_v59 = vld [vmem:[%s1299_s9 + $0x70] sm:$0xff] }
  0xeb   : > { %909 = vpow2.f32 %v373_v38  ;;  %v416_v6 = vadd.f32 %v900_v40, %v898_v2  ;;  %v902_v22 = vpop.eup %901  ;;  %v549_v56 = vsel %vm533_vm11, %v498_v46, 0.0  ;;  %v547_v18 = vsel %vm531_vm12, %v496_v53, 0.0 }
  0xec   : > { %911 = vpow2.f32 %v375_v60  ;;  %423 = vadd.xlane.f32.xlu0 %v422_v21  ;;  %v904_v23 = vpop.eup %903  ;;  %v548_v19 = vsel %vm532_vm13, %v497_v32, 0.0  ;;  %v516_v57 = vadd.s32 112, %v1419_v43  ;;  %v517_v58 = vadd.s32 120, %v1419_v43  ;;  %v553_v20 = vpop.xlane.xlu2 %552 }
  0xed   : > { %913 = vpow2.f32 %v377_v63  ;;  %v419_v27 = vadd.f32 %v904_v23, %v902_v22  ;;  %v559_v21 = vpop.xlane.xlu1 %558 }
  0xee   : > { %v1557_v7 = vpop.xlane.xlu0 %291  ;;  %411 = vadd.xlane.f32.xlu1 %v410_v4  ;;  %915 = vpow2.f32 %v379_v9  ;;  %vm534_vm14 = vcmp.eq.s32.totalorder %v516_v57, %v1427_v47  ;;  %vm535_vm15 = vcmp.eq.s32.totalorder %v517_v58, %v1427_v47 }
  0xef   : > { %v323_v41 = vsub.f32 %v1431_v49, %v1557_v7  ;;  %v324_v8 = vsub.f32 %v1434_v50, %v1557_v7  ;;  %v906_v42 = vpop.eup %905  ;;  %417 = vadd.xlane.f32.xlu2 %v416_v6  ;;  %v512_v49 = vadd.s32 80, %v1419_v43  ;;  %v550_v38 = vsel %vm534_vm14, %v499_v59, 0.0 }
  0xf0   : > { %v908_v16 = vpop.eup %907  ;;  %v551_v60 = vsel %vm535_vm15, %v500_v37, 0.0 }
  0xf1   : > { %v385_v17 = vmul.f32 1.442695, %v323_v41  ;;  %v387_v11 = vmul.f32 1.442695, %v324_v8  ;;  %v910_v24 = vpop.eup %909  ;;  %v431_v12 = vadd.f32 %v908_v16, %v906_v42  ;;  %vm530_vm10 = vcmp.eq.s32.totalorder %v512_v49, %v1427_v47 }
  0xf2   : > { %v912_v25 = vpop.eup %911  ;;  %v546_v33 = vsel %vm530_vm10, %v495_v26, 0.0 }
  0xf3   : > { %917 = vpow2.f32 %v385_v17  ;;  %v425_v28 = vadd.f32 %v912_v25, %v910_v24  ;;  %v914_v50 = vpop.eup %913 }
  0xf4   : > { %919 = vpow2.f32 %v387_v11  ;;  %432 = vadd.xlane.f32.xlu0 %v431_v12  ;;  %v916_v13 = vpop.eup %915  ;;  %v557_v39 = vpop.xlane.xlu2 %556 }
  0xf5   : > { %v428_v30 = vadd.f32 %v916_v13, %v914_v50  ;;  %v1583_v4 = vpop.xlane.xlu1 %564 }
  0xf6   : > { %420 = vadd.xlane.f32.xlu1 %v419_v27  ;;  %v555_v2 = vpop.xlane.xlu0 %554 }
  0xf7   : > { %426 = vadd.xlane.f32.xlu2 %v425_v28 }
  0xf9   : > { %v918_v0 = vpop.eup %917 }
  0xfa   : > { %v920_v29 = vpop.eup %919 }
  0xfb   : > { %v434_v34 = vadd.f32 %v920_v29, %v918_v0 }
  0xfc   : > { %572 = vadd.xlane.f32.xlu0 %v546_v33  ;;  %v1585_v43 = vpop.xlane.xlu2 %562 }
  0xfd   : > { %v1589_v63 = vpop.xlane.xlu1 %570 }
  0xfe   : > { %429 = vadd.xlane.f32.xlu1 %v428_v30  ;;  %v1581_v40 = vpop.xlane.xlu0 %560 }
  0xff   : > { %435 = vadd.xlane.f32.xlu2 %v434_v34 }
 0x104   : > { %578 = vadd.xlane.f32.xlu0 %v549_v56  ;;  %v1591_v22 = vpop.xlane.xlu2 %568 }
 0x106   : > { %574 = vadd.xlane.f32.xlu1 %v547_v18  ;;  %v1587_v6 = vpop.xlane.xlu0 %566 }
 0x107   : > { %576 = vadd.xlane.f32.xlu2 %v548_v19 }
 0x10e   : > { %580 = vadd.xlane.f32.xlu1 %v550_v38 }
 0x10f   : > { %582 = vadd.xlane.f32.xlu2 %v551_v60 }
 0x147   : > { %v397_v47 = vpop.xlane.xlu0 %396 }
 0x149   : > { %v391_v9 = vpop.xlane.xlu1 %390 }
 0x14a   : > { %921 = vlog2.f32 %v391_v9 }
 0x14b   : > { %923 = vlog2.f32 %v397_v47 }
 0x14f   : > { %v406_v23 = vpop.xlane.xlu0 %405 }
 0x150   : > { %v922_v41 = vpop.eup %921 }
 0x151   : > { %v400_v8 = vpop.xlane.xlu1 %399  ;;  %v924_v16 = vpop.eup %923  ;;  %v438_v17 = vmul.f32 0.6931472, %v922_v41 }
 0x152   : > { %v394_v42 = vpop.xlane.xlu2 %393  ;;  %925 = vlog2.f32 %v400_v8  ;;  %v442_v11 = vmul.f32 0.6931472, %v924_v16 }
 0x153   : > { %927 = vlog2.f32 %v394_v42  ;;  %v469_v25 = vadd.f32 %v438_v17, %v1471_v52 }
 0x154   : > { %929 = vlog2.f32 %v406_v23  ;;  %v471_v13 = vadd.f32 %v442_v11, %v1469_v51 }
 0x155   : > { %v584_v29 = vsub.f32 %v469_v25, %v553_v20 }
 0x156   : > { %v586_v34 = vsub.f32 %v471_v13, %v557_v39 }
 0x157   : > { %v415_v24 = vpop.xlane.xlu0 %414  ;;  %v601_v46 = vsel %vm600_vm0, %v584_v29, 0.0 }
 0x158   : > { %v926_v12 = vpop.eup %925 }
 0x159   : > { %v928_v27 = vpop.eup %927  ;;  %v444_v28 = vmul.f32 0.6931472, %v926_v12  ;;  %v409_v50 = vpop.xlane.xlu1 %408 }
 0x15a   : > { %v403_v49 = vpop.xlane.xlu2 %402  ;;  %v440_v26 = vmul.f32 0.6931472, %v928_v27  ;;  %v930_v0 = vpop.eup %929 }
 0x15b   : > { %931 = vlog2.f32 %v403_v49  ;;  %v472_v30 = vadd.f32 %v444_v28, %v1487_v62  ;;  %v448_v36 = vmul.f32 0.6931472, %v930_v0 }
 0x15c   : > { %933 = vlog2.f32 %v409_v50  ;;  %v470_v33 = vadd.f32 %v440_v26, %v1489_v5  ;;  %v604_v5 = vsel %vm600_vm0, %v586_v34, 0.0 }
 0x15d   : > { %935 = vlog2.f32 %v415_v24  ;;  %v587_v32 = vsub.f32 %v472_v30, %v559_v21  ;;  %v474_v62 = vadd.f32 %v448_v36, %v1481_v61 }
 0x15e   : > { %v585_v1 = vsub.f32 %v470_v33, %v555_v2 }
 0x15f   : > { %v424_v52 = vpop.xlane.xlu0 %423  ;;  %v606_v60 = vsel %vm600_vm0, %v587_v32, 0.0  ;;  %v589_v2 = vsub.f32 %v474_v62, %v1585_v43 }
 0x160   : > { %v602_v51 = vsel %vm600_vm0, %v585_v1, 0.0 }
 0x161   : > { %v932_v31 = vpop.eup %931  ;;  %v603_v56 = vadd.f32 %v602_v51, %v601_v46  ;;  %v412_v19 = vpop.xlane.xlu1 %411  ;;  %v610_v17 = vsel %vm600_vm0, %v589_v2, 0.0 }
 0x162   : > { %v934_v53 = vpop.eup %933  ;;  %v446_v18 = vmul.f32 0.6931472, %v932_v31  ;;  %v418_v57 = vpop.xlane.xlu2 %417  ;;  %937 = vlog2.f32 %v412_v19 }
 0x163   : > { %v450_v58 = vmul.f32 0.6931472, %v934_v53  ;;  %v605_v59 = vadd.f32 %v604_v5, %v603_v56  ;;  %939 = vlog2.f32 %v418_v57  ;;  %v936_v38 = vpop.eup %935 }
 0x164   : > { %v473_v37 = vadd.f32 %v446_v18, %v1467_v48  ;;  %v454_v23 = vmul.f32 0.6931472, %v936_v38  ;;  %941 = vlog2.f32 %v424_v52 }
 0x165   : > { %v607_v21 = vadd.f32 %v606_v60, %v605_v59  ;;  %v475_v39 = vadd.f32 %v450_v58, %v1509_v44 }
 0x166   : > { %v588_v20 = vsub.f32 %v473_v37, %v1581_v40  ;;  %v477_v44 = vadd.f32 %v454_v23, %v1503_v35 }
 0x167   : > { %v433_v41 = vpop.xlane.xlu0 %432  ;;  %v590_v40 = vsub.f32 %v475_v39, %v1583_v4 }
 0x168   : > { %v608_v47 = vsel %vm600_vm0, %v588_v20, 0.0  ;;  %v938_v9 = vpop.eup %937  ;;  %v592_v13 = vsub.f32 %v477_v44, %v1591_v22 }
 0x169   : > { %v609_v61 = vadd.f32 %v608_v47, %v607_v21  ;;  %v940_v8 = vpop.eup %939  ;;  %v452_v42 = vmul.f32 0.6931472, %v938_v9  ;;  %v421_v48 = vpop.xlane.xlu1 %420  ;;  %v612_v25 = vsel %vm600_vm0, %v590_v40, 0.0 }
 0x16a   : > { %v427_v16 = vpop.xlane.xlu2 %426  ;;  %943 = vlog2.f32 %v421_v48  ;;  %v456_v24 = vmul.f32 0.6931472, %v940_v8  ;;  %v942_v27 = vpop.eup %941  ;;  %v616_v30 = vsel %vm600_vm0, %v592_v13, 0.0 }
 0x16b   : > { %v611_v43 = vadd.f32 %v610_v17, %v609_v61  ;;  %v476_v11 = vadd.f32 %v452_v42, %v1511_v45  ;;  %945 = vlog2.f32 %v427_v16  ;;  %v460_v1 = vmul.f32 0.6931472, %v942_v27 }
 0x16c   : > { %v478_v4 = vadd.f32 %v456_v24, %v1527_v10  ;;  %947 = vlog2.f32 %v433_v41 }
 0x16d   : > { %v591_v12 = vsub.f32 %v476_v11, %v1587_v6  ;;  %v613_v28 = vadd.f32 %v612_v25, %v611_v43  ;;  %v480_v53 = vadd.f32 %v460_v1, %v1521_v3 }
 0x16e   : > { %v593_v34 = vsub.f32 %v478_v4, %v1589_v63 }
 0x16f   : > { %v614_v49 = vsel %vm600_vm0, %v591_v12, 0.0  ;;  %v573_v26 = vpop.xlane.xlu0 %572 }
 0x170   : > { %v944_v50 = vpop.eup %943  ;;  %v615_v45 = vadd.f32 %v614_v49, %v613_v28  ;;  %v618_v46 = vsel %vm600_vm0, %v593_v34, 0.0 }
 0x171   : > { %v946_v0 = vpop.eup %945  ;;  %v458_v29 = vmul.f32 0.6931472, %v944_v50  ;;  %v430_v35 = vpop.xlane.xlu1 %429 }
 0x172   : > { %v436_v33 = vpop.xlane.xlu2 %435  ;;  %949 = vlog2.f32 %v430_v35  ;;  %v462_v36 = vmul.f32 0.6931472, %v946_v0  ;;  %v617_v22 = vadd.f32 %v616_v30, %v615_v45  ;;  %v948_v10 = vpop.eup %947 }
 0x173   : > { %951 = vlog2.f32 %v436_v33  ;;  %v479_v6 = vadd.f32 %v458_v29, %v1529_v15  ;;  %v466_v37 = vmul.f32 0.6931472, %v948_v10 }
 0x174   : > { %v481_v32 = vadd.f32 %v462_v36, %v1545_v54  ;;  %v619_v18 = vadd.f32 %v618_v46, %v617_v22 }
 0x175   : > { %v594_v52 = vsub.f32 %v479_v6, %v573_v26  ;;  %v483_v39 = vadd.f32 %v466_v37, %v1539_v14 }
 0x177   : > { %v620_v51 = vsel %vm600_vm0, %v594_v52, 0.0  ;;  %v579_v62 = vpop.xlane.xlu0 %578 }
 0x178   : > { %v950_v31 = vpop.eup %949  ;;  %v621_v58 = vadd.f32 %v620_v51, %v619_v18 }
 0x179   : > { %v952_v56 = vpop.eup %951  ;;  %v464_v15 = vmul.f32 0.6931472, %v950_v31  ;;  %v575_v19 = vpop.xlane.xlu1 %574 }
 0x17a   : > { %v577_v57 = vpop.xlane.xlu2 %576  ;;  %v595_v63 = vsub.f32 %v480_v53, %v575_v19  ;;  %v468_v38 = vmul.f32 0.6931472, %v952_v56 }
 0x17b   : > { %v596_v5 = vsub.f32 %v481_v32, %v577_v57  ;;  %v482_v59 = vadd.f32 %v464_v15, %v1547_v55 }
 0x17c   : > { %v622_v60 = vsel %vm600_vm0, %v595_v63, 0.0  ;;  %v484_v47 = vadd.f32 %v468_v38, %v1557_v7 }
 0x17d   : > { %v623_v20 = vadd.f32 %v622_v60, %v621_v58  ;;  %v597_v2 = vsub.f32 %v482_v59, %v579_v62  ;;  %v624_v3 = vsel %vm600_vm0, %v596_v5, 0.0 }
 0x17f   : > { %v625_v54 = vadd.f32 %v624_v3, %v623_v20  ;;  %v626_v21 = vsel %vm600_vm0, %v597_v2, 0.0 }
 0x181   : > { %v581_v9 = vpop.xlane.xlu1 %580  ;;  %v627_v41 = vadd.f32 %v626_v21, %v625_v54 }
 0x182   : > { %v583_v61 = vpop.xlane.xlu2 %582  ;;  %v598_v23 = vsub.f32 %v483_v39, %v581_v9 }
 0x183   : > { %v599_v55 = vsub.f32 %v484_v47, %v583_v61 }
 0x184   : > { %v628_v8 = vsel %vm600_vm0, %v598_v23, 0.0 }
 0x185   : > { %v629_v42 = vadd.f32 %v628_v8, %v627_v41  ;;  %v630_v48 = vsel %vm600_vm0, %v599_v55, 0.0 }
 0x187   : > { %v631_v16 = vadd.f32 %v630_v48, %v629_v42 }
 0x189   : > { %632 = vadd.xlane.f32.xlu0 %v631_v16 }
 0x1fc   : > { %v633_v17 = vpop.xlane.xlu0 %632 }
 0x1fd   : > { %v634_v40 = vrot.slane %v633_v17, 4 }
 0x1ff   : > { %v635_v43 = vadd.f32 %v634_v40, %v633_v17 }
 0x201   : > { %v636_v14 = vrot.slane %v635_v43, 2 }
 0x203   : > { %v637_v7 = vadd.f32 %v636_v14, %v635_v43 }
 0x205   : > { %v638_v11 = vrot.slane %v637_v7, 1 }
 0x207   : > { %v639_v44 = vadd.f32 %v638_v11, %v637_v7 }
 0x209   : > { %776 = vpush %v639_v44 }
 0x23a   : > { %s777_s5 = spop %776 }
 0x23b   : > { %v641_v24 = vstv %s777_s5 }
 0x23c   : > { %642 = vst [vmem:[%s210_s25] sm:$0xff] %v641_v24 }
 0x23d   : > { %1040 = shalt.err (!%p1037_p11)
}
 0x23e   : > { %782 = dma.vmem_to_hbm [thread:$0]  (%p1199_p10), %s657_s29, 128, %s659_s4, %s644_s0  }
 0x23f PF: > { %s670_s8 = sand.u32 1, %s1095_s12   ;;  %p1697_p13 = scmp.ge.s32.totalorder %s1107_s15, 2 }
 0x240   : > { %s671_s23 = scalar_lea.sflag [#allocation4], %s670_s8 }
 0x241   : > { %p792_p1 = pnand %p1697_p13, %p1204_p12 }
 0x243   : > { %p793_p7 = pneg %p792_p1 }
 0x245   : > { %1078 = dma.done.wait (%p793_p7), %s671_s23, 128  }
 0x246   : > { %1080 = vsyncadd (%p793_p7), %s671_s23, 4294967168  ;;  %p18_p10 = scmp.ge.s32.totalorder %s1168_s18, 4   ;;  %s1698_s9 = smov %s1087_s10 }
 0x247   : > { %s1699_s10 = smov %s1091_s11  ;;  %s1700_s11 = smov %s1248_s24 }
 0x248   : > { %s1701_s12 = smov %s1099_s13  ;;  %s1702_s13 = smov %s1103_s14 }
 0x249   : > { %s1703_s14 = smov %s1180_s21  ;;  %s1704_s15 = smov %s1168_s18 }
 0x24a   :  { %20 = sbr.rel (!%p18_p10) target bundleno = 11 (0xb), region = 86 }
 0x24f   :  { %677 = vsyncpa [#allocation3], 1 }
 0x250   :  { %679 = vsyncpa [#allocation3 + $0x1], 1 }
 0x251   :  { %680 = vsyncpa [#allocation6], 1 }
 0x252   :  { %682 = vsyncpa [#allocation6 + $0x1], 1 }
 0x253   :  { %683 = vsyncpa [#allocation4], 1 }
 0x254   :  { %685 = vsyncpa [#allocation4 + $0x1], 1 }

</bundles_post_ra>
